<compile_context>
chip_gen: v7x
topology: tpu7x:2x2x1
jax: 0.10.0
libtpu: 0.0.40
codegen_flags: <defaults>
</compile_context>

<pallas_src>
import jax
import jax.numpy as jnp
import numpy as np
from jax.experimental import pallas as pl
from jax.experimental.pallas import tpu as pltpu

BN_EPS = 1e-5
NEG_SLOPE = 0.1


def _make_conv_stats_kernel(K, C_in, C_out, l_tile, pad, L, multi_tile, need_mask):
    """Pass 1: Conv1d (single folded MXU matmul) + per-tile BN partials."""
    halo = 2 * pad  # 14 columns, always <= 128

    def _compute(window, w_ref, y_ref, stats_ref):
        # im2col along sublanes: A[k*C_in + ci, l] = window[ci, l + k]
        a = jnp.concatenate([window[:, k:k + l_tile] for k in range(K)], axis=0)
        # One MXU matmul with contraction depth K*C_in (not 15 depth-C_in ones).
        y = jnp.dot(w_ref[...], a, preferred_element_type=jnp.float32)  # (C_out, l_tile)
        y_ref[0] = y

        # Per-tile BN partials: sum and *centered* sum of squares (numerically
        # safe; combined with the parallel-variance formula in the wrapper).
        if need_mask:
            l0 = pl.program_id(1) * l_tile
            cols = jax.lax.broadcasted_iota(jnp.int32, (C_out, l_tile), 1)
            valid = L - l0                                   # may exceed l_tile
            mask = cols < valid
            cnt = jnp.minimum(valid, l_tile).astype(jnp.float32)
            ym = jnp.where(mask, y, 0.0)
            tsum = jnp.sum(ym, axis=1, keepdims=True)        # (C_out, 1)
            cent = jnp.where(mask, y - tsum / cnt, 0.0)
        else:
            tsum = jnp.sum(y, axis=1, keepdims=True)
            cent = y - tsum * (1.0 / float(l_tile))
        m2 = jnp.sum(cent * cent, axis=1, keepdims=True)     # (C_out, 1)
        stats_ref[0, 0] = jnp.concatenate([tsum, m2], axis=1)  # (C_out, 2)

    if multi_tile:
        def kernel(xa_ref, xh_ref, w_ref, y_ref, stats_ref):
            # Body tile + first `halo` columns of the neighbouring 128-block.
            window = jnp.concatenate([xa_ref[0], xh_ref[0, :, :halo]], axis=1)
            _compute(window, w_ref, y_ref, stats_ref)
    else:
        def kernel(xa_ref, w_ref, y_ref, stats_ref):
            _compute(xa_ref[0], w_ref, y_ref, stats_ref)

    return kernel


def _bn_lrelu_kernel(y_ref, scale_ref, shift_ref, o_ref):
    """Pass 2: per-channel affine (from batch stats) + LeakyReLU, lane-dense."""
    y = y_ref[0]                                             # (C_out, l_tile2)
    out = y * scale_ref[...] + shift_ref[...]                # (C_out,1) broadcast
    o_ref[0] = jnp.where(out >= 0, out, NEG_SLOPE * out)


def _decoder_in_layer_impl(x_ncw, weight, bias, gamma, beta,
                           kernel_size=15, padding=7, max_l_tile=1024):
    # Conv bias is mathematically cancelled by training-mode BN mean
    # subtraction, so it is not used (verified against the biased reference).
    del bias

    N, C_in, L = x_ncw.shape
    C_out, c_in_w, K = weight.shape
    assert c_in_w == C_in and K == kernel_size
    # Module defaults: stride=1, dilation=1, "same" conv.
    assert 2 * padding == K - 1

    # ---- Pass-1 L tiling (lane axis), capped so the im2col stays ~2 MiB. ----
    vmem_cap = (2 * 1024 * 1024) // (4 * K * C_in)
    cap = max(128, (vmem_cap // 128) * 128)
    l_tile = min(max_l_tile, cap)
    if L <= l_tile:
        l_tile = L
        nlt = 1
    else:
        assert l_tile % 128 == 0, "L tile must be lane-aligned when tiling"
        nlt = -(-L // l_tile)
    l_padded = nlt * l_tile
    multi_tile = nlt > 1
    need_mask = multi_tile and (l_padded != L)

    x_f32 = x_ncw.astype(jnp.float32)
    # Fold taps into the contraction dim: w2[co, k*C_in + ci] = w[co, ci, k].
    w2 = jnp.transpose(weight.astype(jnp.float32), (0, 2, 1)).reshape(C_out, K * C_in)

    grid = (N, nlt)
    cparams = pltpu.CompilerParams(
        dimension_semantics=("parallel", "parallel"),   # megacore on v7x
        vmem_limit_bytes=32 * 1024 * 1024)

    y_spec = pl.BlockSpec((1, C_out, l_tile), lambda n, lt: (n, 0, lt))
    stats_spec = pl.BlockSpec((1, 1, C_out, 2), lambda n, lt: (n, lt, 0, 0))
    w_spec = pl.BlockSpec((C_out, K * C_in), lambda n, lt: (0, 0))

    conv_kernel = _make_conv_stats_kernel(
        K, C_in, C_out, l_tile, padding, L, multi_tile, need_mask)

    # ---------------- Pass 1: conv + per-tile BN partials ----------------
    if multi_tile:
        # Left halo of `padding` zeros, right pad so that a full 128-column
        # neighbour block exists even for the last tile.
        right = l_padded + 128 - L - padding
        x_pad = jnp.pad(x_f32, ((0, 0), (0, 0), (padding, right)))
        blk = l_tile // 128
        in_specs = [
            pl.BlockSpec((1, C_in, l_tile), lambda n, lt: (n, 0, lt)),
            pl.BlockSpec((1, C_in, 128), lambda n, lt: (n, 0, (lt + 1) * blk)),
            w_spec,
        ]
        args = (x_pad, x_pad, w2)
    else:
        x_pad = jnp.pad(x_f32, ((0, 0), (0, 0), (padding, padding)))
        in_specs = [
            pl.BlockSpec((1, C_in, L + 2 * padding), lambda n, lt: (n, 0, 0)),
            w_spec,
        ]
        args = (x_pad, w2)

    y, stats = pl.pallas_call(
        conv_kernel,
        grid=grid,
        in_specs=in_specs,
        out_specs=(y_spec, stats_spec),
        out_shape=(
            jax.ShapeDtypeStruct((N, C_out, l_padded), jnp.float32),
            jax.ShapeDtypeStruct((N, nlt, C_out, 2), jnp.float32),
        ),
        compiler_params=cparams,
    )(*args)

    # ---- Combine per-tile partials (tiny per-channel math, runs in XLA). ----
    counts = np.minimum(l_tile, L - np.arange(nlt) * l_tile).astype(np.float32)
    total = float(N * L)
    tile_sum = stats[..., 0]                               # (N, nlt, C_out)
    tile_m2 = stats[..., 1]
    mean = jnp.sum(tile_sum, axis=(0, 1)) / total          # (C_out,)
    tile_mean = tile_sum / counts[None, :, None]
    delta = tile_mean - mean[None, None, :]
    m2 = (jnp.sum(tile_m2, axis=(0, 1))
          + jnp.sum(counts[None, :, None] * delta * delta, axis=(0, 1)))
    var = m2 / total                                       # biased (training-mode BN)
    inv = jax.lax.rsqrt(var + BN_EPS)
    scale = (gamma.astype(jnp.float32) * inv).reshape(C_out, 1)
    shift = (beta.astype(jnp.float32) - mean * gamma.astype(jnp.float32) * inv
             ).reshape(C_out, 1)

    # ---------------- Pass 2: normalize + LeakyReLU (in place) ----------------
    # Coarser L tiling: elementwise pass is memory-bound, so amortize the
    # per-grid-step overhead with the largest lane-aligned tile that divides
    # l_padded and stays within a modest VMEM budget.
    if multi_tile:
        budget_cols = max(128, ((2 * 1024 * 1024) // (4 * C_out) // 128) * 128)
        l_tile2 = l_tile
        start = min(l_padded, budget_cols)
        for cand in range(start, 0, -128):
            if l_padded % cand == 0:
                l_tile2 = cand
                break
    else:
        l_tile2 = l_padded
    nlt2 = l_padded // l_tile2

    y2_spec = pl.BlockSpec((1, C_out, l_tile2), lambda n, lt: (n, 0, lt))
    ch_spec = pl.BlockSpec((C_out, 1), lambda n, lt: (0, 0))

    out = pl.pallas_call(
        _bn_lrelu_kernel,
        grid=(N, nlt2),
        in_specs=[y2_spec, ch_spec, ch_spec],
        out_specs=y2_spec,
        out_shape=jax.ShapeDtypeStruct((N, C_out, l_padded), jnp.float32),
        input_output_aliases={0: 0},        # reuse conv-output HBM buffer
        compiler_params=cparams,
    )(y, scale, shift)

    if l_padded != L:
        out = out[:, :, :L]
    return out


decoder_in_layer = jax.jit(
    _decoder_in_layer_impl,
    static_argnames=("kernel_size", "padding", "max_l_tile"))


def reference_forward(x_ncw, weight, bias, gamma, beta, padding=7):
    """Plain-JAX reference mirroring the PyTorch module (training-mode BN)."""
    y = jax.lax.conv_general_dilated(
        x_ncw, weight, window_strides=(1,), padding=[(padding, padding)],
        dimension_numbers=("NCH", "OIH", "NCH"))
    y = y + bias[None, :, None]
    mean = y.mean(axis=(0, 2), keepdims=True)
    var = ((y - mean) ** 2).mean(axis=(0, 2), keepdims=True)
    yn = (y - mean) / jnp.sqrt(var + BN_EPS)
    yn = yn * gamma[None, :, None] + beta[None, :, None]
    return jnp.where(yn >= 0, yn, NEG_SLOPE * yn)


if __name__ == "__main__":
    # Small shapes consistent with the module's forward (N, C_in, L).
    N, C_in, C_out, L, K = 2, 4, 8, 16, 15

    key = jax.random.PRNGKey(0)
    kx, kw, kb, kg, kbe, kx2 = jax.random.split(key, 6)

    x = jax.random.normal(kx, (N, C_in, L), dtype=jnp.float32)
    # Deterministic synthetic parameters (not a checkpoint load).
    weight = jax.random.normal(kw, (C_out, C_in, K), dtype=jnp.float32) * 0.1
    bias = jax.random.normal(kb, (C_out,), dtype=jnp.float32) * 0.1
    gamma = 1.0 + 0.1 * jax.random.normal(kg, (C_out,), dtype=jnp.float32)
    beta = 0.1 * jax.random.normal(kbe, (C_out,), dtype=jnp.float32)

    # Single-tile path.
    out = jax.block_until_ready(decoder_in_layer(x, weight, bias, gamma, beta))
    ref = reference_forward(x, weight, bias, gamma, beta)
    assert out.shape == (N, C_out, L)
    assert np.allclose(np.asarray(out), np.asarray(ref), atol=1e-4, rtol=1e-4)

    # Multi-tile path: L tiling, halo via neighbour BlockSpec, masked BN
    # partials, coarse in-place pass 2.
    L2 = 320
    x2 = jax.random.normal(kx2, (N, C_in, L2), dtype=jnp.float32)
    out2 = jax.block_until_ready(
        decoder_in_layer(x2, weight, bias, gamma, beta, max_l_tile=128))
    ref2 = reference_forward(x2, weight, bias, gamma, beta)
    assert out2.shape == (N, C_out, L2)
    assert np.allclose(np.asarray(out2), np.asarray(ref2), atol=1e-4, rtol=1e-4)

    print("KERNEL_OK")
</pallas_src>

<mosaic_0001>
module attributes {stable_mosaic.version = 11 : i64} {
  func.func @kernel(%arg0: i32, %arg1: i32, %arg2: memref<1x4x30xf32, #tpu.memory_space<vmem>>, %arg3: memref<8x60xf32, #tpu.memory_space<vmem>>, %arg4: memref<1x8x16xf32, #tpu.memory_space<vmem>>, %arg5: memref<1x1x8x2xf32, #tpu.memory_space<vmem>>) attributes {dimension_semantics = [#tpu.dimension_semantics<parallel>, #tpu.dimension_semantics<parallel>], iteration_bounds = array<i64: 2, 1>, scalar_prefetch = 0 : i64, scratch_operands = 0 : i64, tpu.core_type = #tpu.core_type<tc>, window_params = [{transform_indices = @transform_0, window_bounds = array<i64: 1, 4, 30>}, {pipeline_mode = #tpu.pipeline_mode<synchronous>, transform_indices = @transform_1, window_bounds = array<i64: 8, 60>}, {transform_indices = @transform_2, window_bounds = array<i64: 1, 8, 16>}, {transform_indices = @transform_3, window_bounds = array<i64: 1, 1, 8, 2>}]} {
    %c0 = arith.constant 0 : index
    %c0_0 = arith.constant 0 : index
    %c0_1 = arith.constant 0 : index
    %0 = vector.load %arg2[%c0, %c0_0, %c0_1] : memref<1x4x30xf32, #tpu.memory_space<vmem>>, vector<1x4x30xf32>
    %1 = vector.shape_cast %0 : vector<1x4x30xf32> to vector<4x30xf32>
    %2 = vector.extract_strided_slice %1 {offsets = [0, 0], sizes = [4, 16], strides = [1, 1]} : vector<4x30xf32> to vector<4x16xf32>
    %3 = vector.extract_strided_slice %1 {offsets = [0, 1], sizes = [4, 16], strides = [1, 1]} : vector<4x30xf32> to vector<4x16xf32>
    %4 = vector.extract_strided_slice %1 {offsets = [0, 2], sizes = [4, 16], strides = [1, 1]} : vector<4x30xf32> to vector<4x16xf32>
    %5 = vector.extract_strided_slice %1 {offsets = [0, 3], sizes = [4, 16], strides = [1, 1]} : vector<4x30xf32> to vector<4x16xf32>
    %6 = vector.extract_strided_slice %1 {offsets = [0, 4], sizes = [4, 16], strides = [1, 1]} : vector<4x30xf32> to vector<4x16xf32>
    %7 = vector.extract_strided_slice %1 {offsets = [0, 5], sizes = [4, 16], strides = [1, 1]} : vector<4x30xf32> to vector<4x16xf32>
    %8 = vector.extract_strided_slice %1 {offsets = [0, 6], sizes = [4, 16], strides = [1, 1]} : vector<4x30xf32> to vector<4x16xf32>
    %9 = vector.extract_strided_slice %1 {offsets = [0, 7], sizes = [4, 16], strides = [1, 1]} : vector<4x30xf32> to vector<4x16xf32>
    %10 = vector.extract_strided_slice %1 {offsets = [0, 8], sizes = [4, 16], strides = [1, 1]} : vector<4x30xf32> to vector<4x16xf32>
    %11 = vector.extract_strided_slice %1 {offsets = [0, 9], sizes = [4, 16], strides = [1, 1]} : vector<4x30xf32> to vector<4x16xf32>
    %12 = vector.extract_strided_slice %1 {offsets = [0, 10], sizes = [4, 16], strides = [1, 1]} : vector<4x30xf32> to vector<4x16xf32>
    %13 = vector.extract_strided_slice %1 {offsets = [0, 11], sizes = [4, 16], strides = [1, 1]} : vector<4x30xf32> to vector<4x16xf32>
    %14 = vector.extract_strided_slice %1 {offsets = [0, 12], sizes = [4, 16], strides = [1, 1]} : vector<4x30xf32> to vector<4x16xf32>
    %15 = vector.extract_strided_slice %1 {offsets = [0, 13], sizes = [4, 16], strides = [1, 1]} : vector<4x30xf32> to vector<4x16xf32>
    %16 = vector.extract_strided_slice %1 {offsets = [0, 14], sizes = [4, 16], strides = [1, 1]} : vector<4x30xf32> to vector<4x16xf32>
    %17 = tpu.concatenate %2, %3, %4, %5, %6, %7, %8, %9, %10, %11, %12, %13, %14, %15, %16 in 0 : vector<4x16xf32>, vector<4x16xf32>, vector<4x16xf32>, vector<4x16xf32>, vector<4x16xf32>, vector<4x16xf32>, vector<4x16xf32>, vector<4x16xf32>, vector<4x16xf32>, vector<4x16xf32>, vector<4x16xf32>, vector<4x16xf32>, vector<4x16xf32>, vector<4x16xf32>, vector<4x16xf32> -> vector<60x16xf32>
    %c0_2 = arith.constant 0 : index
    %c0_3 = arith.constant 0 : index
    %18 = vector.load %arg3[%c0_2, %c0_3] : memref<8x60xf32, #tpu.memory_space<vmem>>, vector<8x60xf32>
    %cst = arith.constant dense<0.000000e+00> : vector<8x16xf32>
    %19 = tpu.matmul %18, %17, %cst {dimension_numbers = #tpu.dot_dimension_numbers<[1], [0], [0], [1], [0, 0, 1, 1], [], []>} : vector<8x60xf32>, vector<60x16xf32>, vector<8x16xf32> -> vector<8x16xf32>
    %c0_4 = arith.constant 0 : index
    %c0_5 = arith.constant 0 : index
    %c0_6 = arith.constant 0 : index
    %20 = vector.load %arg4[%c0_4, %c0_5, %c0_6] : memref<1x8x16xf32, #tpu.memory_space<vmem>>, vector<1x8x16xf32>
    %21 = vector.shape_cast %20 : vector<1x8x16xf32> to vector<8x16xf32>
    %22 = vector.shape_cast %19 : vector<8x16xf32> to vector<1x8x16xf32>
    tpu.vector_store %arg4[%c0_4, %c0_5, %c0_6], %22 {strides = array<i32>} : memref<1x8x16xf32, #tpu.memory_space<vmem>>, vector<1x8x16xf32>,
    %cst_7 = arith.constant dense<0.000000e+00> : vector<8xf32>
    %23 = vector.multi_reduction <add>, %19, %cst_7 [1] : vector<8x16xf32> to vector<8xf32>
    %24 = vector.shape_cast %23 : vector<8xf32> to vector<8x1xf32>
    %cst_8 = arith.constant 6.250000e-02 : f32
    %25 = vector.broadcast %cst_8 : f32 to vector<8x1xf32>
    %26 = arith.mulf %24, %25 : vector<8x1xf32>
    %27 = vector.broadcast %26 : vector<8x1xf32> to vector<8x16xf32>
    %28 = arith.subf %19, %27 : vector<8x16xf32>
    %29 = arith.mulf %28, %28 : vector<8x16xf32>
    %cst_9 = arith.constant dense<0.000000e+00> : vector<8xf32>
    %30 = vector.multi_reduction <add>, %29, %cst_9 [1] : vector<8x16xf32> to vector<8xf32>
    %31 = vector.shape_cast %30 : vector<8xf32> to vector<8x1xf32>
    %32 = tpu.concatenate %24, %31 in 1 : vector<8x1xf32>, vector<8x1xf32> -> vector<8x2xf32>
    %c0_10 = arith.constant 0 : index
    %c0_11 = arith.constant 0 : index
    %c0_12 = arith.constant 0 : index
    %c0_13 = arith.constant 0 : index
    %33 = vector.load %arg5[%c0_10, %c0_11, %c0_12, %c0_13] : memref<1x1x8x2xf32, #tpu.memory_space<vmem>>, vector<1x1x8x2xf32>
    %34 = vector.shape_cast %33 : vector<1x1x8x2xf32> to vector<8x2xf32>
    %35 = vector.shape_cast %32 : vector<8x2xf32> to vector<1x1x8x2xf32>
    tpu.vector_store %arg5[%c0_10, %c0_11, %c0_12, %c0_13], %35 {strides = array<i32>} : memref<1x1x8x2xf32, #tpu.memory_space<vmem>>, vector<1x1x8x2xf32>,
    return
  }
  func.func @transform_0(%arg0: i32, %arg1: i32) -> (i32, i32, i32) {
    %c0_i32 = arith.constant 0 : i32
    %c0_i32_0 = arith.constant 0 : i32
    %c0_i32_1 = arith.constant 0 : i32
    return %arg0, %c0_i32, %c0_i32_0 : i32, i32, i32
  }
  func.func @transform_1(%arg0: i32, %arg1: i32) -> (i32, i32) {
    %c0_i32 = arith.constant 0 : i32
    %c0_i32_0 = arith.constant 0 : i32
    %c0_i32_1 = arith.constant 0 : i32
    return %c0_i32, %c0_i32_0 : i32, i32
  }
  func.func @transform_2(%arg0: i32, %arg1: i32) -> (i32, i32, i32) {
    %c0_i32 = arith.constant 0 : i32
    %c0_i32_0 = arith.constant 0 : i32
    return %arg0, %c0_i32, %arg1 : i32, i32, i32
  }
  func.func @transform_3(%arg0: i32, %arg1: i32) -> (i32, i32, i32, i32) {
    %c0_i32 = arith.constant 0 : i32
    %c0_i32_0 = arith.constant 0 : i32
    %c0_i32_1 = arith.constant 0 : i32
    return %arg0, %arg1, %c0_i32, %c0_i32_0 : i32, i32, i32, i32
  }
}

module attributes {stable_mosaic.version = 11 : i64} {
  func.func @_bn_lrelu_kernel(%arg0: i32, %arg1: i32, %arg2: memref<1x8x16xf32, #tpu.memory_space<vmem>>, %arg3: memref<8x1xf32, #tpu.memory_space<vmem>>, %arg4: memref<8x1xf32, #tpu.memory_space<vmem>>, %arg5: memref<1x8x16xf32, #tpu.memory_space<vmem>>) attributes {dimension_semantics = [#tpu.dimension_semantics<parallel>, #tpu.dimension_semantics<parallel>], iteration_bounds = array<i64: 2, 1>, scalar_prefetch = 0 : i64, scratch_operands = 0 : i64, tpu.core_type = #tpu.core_type<tc>, window_params = [{transform_indices = @transform_0, window_bounds = array<i64: 1, 8, 16>}, {pipeline_mode = #tpu.pipeline_mode<synchronous>, transform_indices = @transform_1, window_bounds = array<i64: 8, 1>}, {pipeline_mode = #tpu.pipeline_mode<synchronous>, transform_indices = @transform_2, window_bounds = array<i64: 8, 1>}, {transform_indices = @transform_3, window_bounds = array<i64: 1, 8, 16>}]} {
    %c0 = arith.constant 0 : index
    %c0_0 = arith.constant 0 : index
    %c0_1 = arith.constant 0 : index
    %0 = vector.load %arg2[%c0, %c0_0, %c0_1] : memref<1x8x16xf32, #tpu.memory_space<vmem>>, vector<1x8x16xf32>
    %1 = vector.shape_cast %0 : vector<1x8x16xf32> to vector<8x16xf32>
    %c0_2 = arith.constant 0 : index
    %c0_3 = arith.constant 0 : index
    %2 = vector.load %arg3[%c0_2, %c0_3] : memref<8x1xf32, #tpu.memory_space<vmem>>, vector<8x1xf32>
    %3 = vector.broadcast %2 : vector<8x1xf32> to vector<8x16xf32>
    %4 = arith.mulf %1, %3 : vector<8x16xf32>
    %c0_4 = arith.constant 0 : index
    %c0_5 = arith.constant 0 : index
    %5 = vector.load %arg4[%c0_4, %c0_5] : memref<8x1xf32, #tpu.memory_space<vmem>>, vector<8x1xf32>
    %6 = vector.broadcast %5 : vector<8x1xf32> to vector<8x16xf32>
    %7 = arith.addf %4, %6 : vector<8x16xf32>
    %cst = arith.constant 0.000000e+00 : f32
    %8 = vector.broadcast %cst : f32 to vector<8x16xf32>
    %9 = arith.cmpf oge, %7, %8 : vector<8x16xf32>
    %cst_6 = arith.constant 1.000000e-01 : f32
    %10 = vector.broadcast %cst_6 : f32 to vector<8x16xf32>
    %11 = arith.mulf %10, %7 : vector<8x16xf32>
    %12 = arith.select %9, %7, %11 : vector<8x16xi1>, vector<8x16xf32>
    %c0_7 = arith.constant 0 : index
    %c0_8 = arith.constant 0 : index
    %c0_9 = arith.constant 0 : index
    %13 = vector.load %arg5[%c0_7, %c0_8, %c0_9] : memref<1x8x16xf32, #tpu.memory_space<vmem>>, vector<1x8x16xf32>
    %14 = vector.shape_cast %13 : vector<1x8x16xf32> to vector<8x16xf32>
    %15 = vector.shape_cast %12 : vector<8x16xf32> to vector<1x8x16xf32>
    tpu.vector_store %arg5[%c0_7, %c0_8, %c0_9], %15 {strides = array<i32>} : memref<1x8x16xf32, #tpu.memory_space<vmem>>, vector<1x8x16xf32>,
    return
  }
  func.func @transform_0(%arg0: i32, %arg1: i32) -> (i32, i32, i32) {
    %c0_i32 = arith.constant 0 : i32
    %c0_i32_0 = arith.constant 0 : i32
    return %arg0, %c0_i32, %arg1 : i32, i32, i32
  }
  func.func @transform_1(%arg0: i32, %arg1: i32) -> (i32, i32) {
    %c0_i32 = arith.constant 0 : i32
    %c0_i32_0 = arith.constant 0 : i32
    %c0_i32_1 = arith.constant 0 : i32
    return %c0_i32, %c0_i32_0 : i32, i32
  }
  func.func @transform_2(%arg0: i32, %arg1: i32) -> (i32, i32) {
    %c0_i32 = arith.constant 0 : i32
    %c0_i32_0 = arith.constant 0 : i32
    %c0_i32_1 = arith.constant 0 : i32
    return %c0_i32, %c0_i32_0 : i32, i32
  }
  func.func @transform_3(%arg0: i32, %arg1: i32) -> (i32, i32, i32) {
    %c0_i32 = arith.constant 0 : i32
    %c0_i32_0 = arith.constant 0 : i32
    return %arg0, %c0_i32, %arg1 : i32, i32, i32
  }
}

</mosaic_0001>

<bundles_post_ra>
// kernel: _decoder_in_layer_impl.2
= control target key start
LH: loop header
LB: loop body
LE: loop exit
PB: predicated region body
PF: predicated region fallthrough
CT: control target
= control target key end

     0   :  { %9 = vsyncpa [#allocation3], 0  ;;  %s842_s0 = inlined_call_operand.vmem [shape: f32[2,4,30], index: 0, kind: input, shape index: {}]   ;;  %s843_s1 = inlined_call_operand.vmem [shape: f32[8,60], index: 1, kind: input, shape index: {}]   ;;  %s844_s2 = inlined_call_operand.hbm [shape: f32[2,8,16], index: 2, kind: output, shape index: {0}]   ;;  %s845_s3 = inlined_call_operand.vmem [shape: f32[2,1,8,2], index: 3, kind: output, shape index: {1}]  }
   0x1   :  { %11 = vsyncpa [#allocation3 + $0x1], 0  ;;  %s714_s12 = smov 0   ;;  %s716_s13 = smov 0  }
   0x2   :  { %s718_s14 = smov 0   ;;  %s720_s15 = smov 0  }
   0x3   :  { %s722_s16 = smov 0   ;;  %s724_s17 = smov 0  }
   0x4 LB: > { %s467_s18 = sadd.s32 4294967295, %s673_s17   ;;  %s468_s19 = sadd.s32 4294967294, %s673_s17   ;;  %s673_s17 = sphi %s724_s17, %s17_s17   ;;  %s669_s16 = sphi %s722_s16, %s852_s16   ;;  %s665_s15 = sphi %s720_s15, %s851_s15   ;;  %s661_s14 = sphi %s718_s14, %s850_s14   ;;  %s657_s13 = sphi %s716_s13, %s849_s13   ;;  %s653_s12 = sphi %s714_s12, %s848_s12  }
   0x5   : > { %s29_s20 = sadd.s32 1, %s669_s16  ;;  %s85_s21 = sadd.s32 1, %s661_s14 }
   0x6   : > { %p31_p0 = scmp.ge.s32.totalorder %s29_s20, 2  ;;  %p95_p1 = scmp.ne.s32.totalorder %s661_s14, %s657_s13 }
   0x7   : > { %p96_p2 = scmp.eq.s32.totalorder %s467_s18, 1  ;;  %p101_p3 = scmp.ne.s32.totalorder %s657_s13, %s653_s12 }
   0x8   : > { %s854_s20 = smov (%p31_p0, %s29_s20), 0  ;;  %p102_p5 = scmp.eq.s32.totalorder %s468_s19, 1 }
   0x9   : > { %p754_p4 = por %p96_p2, %p95_p1  ;;  %s80_s23 = ssub.s32 %s669_s16, %s854_s20 }
   0xa   : > { %p471_p6 = scmp.ge.s32.totalorder %s673_s17, 1  ;;  %p83_p7 = scmp.eq.s32.totalorder %s80_s23, 0 }
   0xb   : > { %p761_p8 = por %p102_p5, %p101_p3  ;;  %p158_p9 = scmp.lt.s32.totalorder %s673_s17, 3 }
   0xc   : > { %s767_s25 = scalar_select %p83_p7, %s661_s14, %s85_s21  }
   0xd   : > { %p159_p10 = pnand %p471_p6, %p158_p9 }
   0xe   : > { %p188_p11 = scmp.lt.s32.totalorder (!%p159_p10), %s665_s15, 1  ;;  %v675_v0 = vmov (!%p159_p10), 0.0|0.0   ;;  %s676_s4 = smov (!%p159_p10), 124   ;;  %vm684_vm0 = vmmov (!%p159_p10), 0   ;;  %v685_v3 = vmov (!%p159_p10), 0.0   ;;  %vm243_vm1 = vcmask (!%p159_p10), 1043456  }
   0xf   : > { %162 = sbr.rel (%p159_p10) target bundleno = 678 (0x2a6), region = 28  ;;  %509 = vmatprep.subr.bf16.mxu0 (!%p159_p10), %v675_v0  ;;  %s677_s5 = smov (!%p159_p10), 126   ;;  %506 = vmatprep.mubr.msk.f32.mxu0 (!%p159_p10), %vm684_vm0, %v685_v3  ;;  %vm692_vm2 = vmmov (!%p159_p10), 1   ;;  %v251_v29 = vld [vmem:[%s843_s1] sm:$0xff] (!%p159_p10)  ;;  %vm252_vm4 = vcmask (!%p159_p10), 490496   ;;  %vm328_vm5 = vcmask (!%p159_p10), 130048  }
  0x10   : > { %s678_s6 = smov (!%p159_p10), 122   ;;  %s679_s7 = smov (!%p159_p10), 127   ;;  %vm520_vm3 = vmpackc.low (!%p159_p10), %vm243_vm1, %vm692_vm2 }
  0x11   : > { %s680_s8 = smov (!%p159_p10), 125   ;;  %s681_s9 = smov (!%p159_p10), 123  }
  0x12   : > { %s682_s10 = smov (!%p159_p10), 121   ;;  %s683_s11 = smov (!%p159_p10), 120  }
  0x13   : > { %s686_s18 = smov (!%p159_p10), 119   ;;  %s687_s19 = smov (!%p159_p10), 118  }
  0x14   : > { %s688_s21 = smov (!%p159_p10), 117   ;;  %s689_s23 = smov (!%p159_p10), 116  }
  0x15   : > { %s691_s28 = smov (!%p159_p10), 114  }
  0x16   : > { %s771_s26 = scalar_select %p188_p11, %s665_s15, 1 }
  0x18   : > { %s473_s27 = sshll.u32 %s771_s26, 2 }
  0x19   : > { %s191_s30 = scalar_lea.vmem %s842_s0, %s473_s27  ;;  %s690_s27 = smov 115  }
  0x1a   : > { %v199_v1 = vld [vmem:[%s191_s30] sm:$0xf] }
  0x1b   : > { %211 = vrot.lane.b32.xlu1 %v199_v1, %s676_s4  ;;  %205 = vrot.lane.b32.xlu0 %v199_v1, %s677_s5  ;;  %v201_v2 = vrot.slane %v199_v1, 4  ;;  %s176_s4 = sand.u32 1, %s657_s13  }
  0x1c   : > { %s472_s5 = sshll.u32 %s176_s4, 3 }
  0x1f   : > { %217 = vrot.lane.b32.xlu1 %v199_v1, %s678_s6  ;;  %202 = vrot.lane.b32.xlu0 %v201_v2, %s679_s7  ;;  %s178_s6 = scalar_lea.vmem [#allocation2], %s472_s5  ;;  %s478_s7 = sshll.u32 %s665_s15, 7 }
  0x23   : > { %208 = vrot.lane.b32.xlu1 %v201_v2, %s680_s8  ;;  %214 = vrot.lane.b32.xlu0 %v201_v2, %s681_s9  ;;  %s365_s8 = sshll.u32 %s178_s6, 4  ;;  %s366_s8 = int_to_ptr.vmem [resolvable:$true] %s365_s8 }
  0x27   : > { %220 = vrot.lane.b32.xlu0 %v201_v2, %s682_s10  ;;  %223 = vrot.lane.b32.xlu1 %v199_v1, %s683_s11  ;;  %s797_s11 = scalar_lea.hbm %s844_s2, %s478_s7 }
  0x2b   : > { %226 = vrot.lane.b32.xlu0 %v201_v2, %s686_s18  ;;  %229 = vrot.lane.b32.xlu1 %v199_v1, %s687_s19  ;;  %s344_s18 = scalar_lea.sflag [#allocation3], %s176_s4  ;;  %s595_s19 = scalar_lea.vmem %s366_s8, 128 }
  0x2c   : > { %p596_p12 = scmp.ne.s32.totalorder %s366_s8, %s595_s19 }
  0x2e   : > { %p597_p13 = pnand %p596_p12, %p754_p4 }
  0x2f   : > { %232 = vrot.lane.b32.xlu0 %v201_v2, %s688_s21  ;;  %235 = vrot.lane.b32.xlu1 %v199_v1, %s689_s23  ;;  %s693_s21 = smov [#allocation2]  }
  0x30   : > { %p598_p0 = pneg %p597_p13  ;;  %s599_s23 = sshll.u32 %s693_s21, 4  ;;  %s600_s23 = int_to_ptr.vmem [resolvable:$false] %s599_s23 }
  0x31   : > { %p602_p1 = scmp.lt.s32.totalorder %s366_s8, %s600_s23 }
  0x33   : > { %238 = vrot.lane.b32.xlu0 %v201_v2, %s690_s27  ;;  %241 = vrot.lane.b32.xlu1 %v199_v1, %s691_s28  ;;  %s601_s27 = scalar_lea.vmem %s600_s23, 256 }
  0x34   : > { %p603_p2 = scmp.lt.s32.totalorder %s601_s27, %s595_s19 }
  0x36   : > { %p604_p3 = por %p603_p2, %p602_p1 }
  0x38   : > { %p605_p5 = pnand %p604_p3, %p598_p0 }
  0x8d   : > { %v212_v4 = vpop.permute.xlu1 %211  ;;  %v206_v5 = vpop.permute.xlu0 %205 }
  0x91   : > { %v218_v6 = vpop.permute.xlu1 %217  ;;  %v203_v7 = vpop.permute.xlu0 %202 }
  0x92   : > { %v244_v10 = vsel %vm243_vm1, %v199_v1, %v203_v7 }
  0x95   : > { %v209_v8 = vpop.permute.xlu1 %208  ;;  %v215_v9 = vpop.permute.xlu0 %214 }
  0x96   : > { %v245_v11 = vsel %vm243_vm1, %v206_v5, %v209_v8  ;;  %v246_v15 = vsel %vm243_vm1, %v212_v4, %v215_v9 }
  0x97   : > { %v510_v12 = vpack.c.bf16 %v245_v11, %v244_v10 }
  0x99   : > { %511 = vmatpush3.bf16.msra.mxu0 %v510_v12  ;;  %v221_v13 = vpop.permute.xlu0 %220  ;;  %v224_v14 = vpop.permute.xlu1 %223 }
  0x9a   : > { %v247_v16 = vsel %vm243_vm1, %v218_v6, %v221_v13  ;;  %512 = vmatprep.subr.bf16.mxu0 %v675_v0 }
  0x9b   : > { %v513_v17 = vpack.c.bf16 %v247_v16, %v246_v15 }
  0x9d   : > { %514 = vmatpush3.bf16.msra.mxu0 %v513_v17  ;;  %v227_v18 = vpop.permute.xlu0 %226  ;;  %v230_v19 = vpop.permute.xlu1 %229 }
  0x9e   : > { %515 = vmatprep.subr.bf16.mxu0 %v675_v0  ;;  %v248_v22 = vsel %vm243_vm1, %v224_v14, %v227_v18 }
  0xa1   : > { %v233_v20 = vpop.permute.xlu0 %232  ;;  %v236_v21 = vpop.permute.xlu1 %235 }
  0xa2   : > { %v249_v23 = vsel %vm243_vm1, %v230_v19, %v233_v20 }
  0xa3   : > { %v516_v24 = vpack.c.bf16 %v249_v23, %v248_v22 }
  0xa5   : > { %517 = vmatpush3.bf16.msra.mxu0 %v516_v24  ;;  %v239_v25 = vpop.permute.xlu0 %238  ;;  %v242_v26 = vpop.permute.xlu1 %241 }
  0xa6   : > { %v250_v27 = vsel %vm243_vm1, %v236_v21, %v239_v25  ;;  %518 = vmatprep.subr.bf16.mxu0 %v675_v0 }
  0xa7   : > { %v519_v28 = vpack.c.bf16 %v242_v26, %v250_v27 }
  0xa9   : > { %521 = vmatpush3.bf16.msk.msra.mxu0 %vm520_vm3, %v519_v28 }
  0xac   : > { %507 = vmatmul.mubr.msk.f32.vlgmr.msra.gmra.mrb[0].mxu0 %vm252_vm4, %v251_v29 }
 0x17f   : > { %v324_v30 = vpop.f32.mrb[0].mxu0 }
 0x180   : > { %v508_v31 = vpop.f32.mrb[1].mxu0  ;;  %v330_v32 = vsel %vm328_vm5, %v324_v30, 0.0  ;;  %329 = vst.msk [vmem:[%s178_s6] sm:$0xff] %vm328_vm5, %v324_v30 }
 0x181   : > { %331 = vadd.xlane.f32.xlu0 %v330_v32 }
 0x20e   : > { %v332_v33 = vpop.xlane.xlu0 %331 }
 0x20f   : > { %v333_v34 = vmul.f32 0.0625, %v332_v33 }
 0x211   : > { %v334_v35 = vsub.f32 %v324_v30, %v333_v34 }
 0x213   : > { %v335_v36 = vmul.f32 %v334_v35, %v334_v35 }
 0x215   : > { %v336_v37 = vsel %vm328_vm5, %v335_v36, 0.0 }
 0x216   : > { %337 = vadd.xlane.f32.xlu1 %v336_v37 }
 0x217   : > { %608 = shalt.err (!%p605_p5)
}
 0x218   : > { %s609_s15 = scalar_lea.hbm %s797_s11, 128  ;;  %s613_s30 = scalar_lea.hbm %s844_s2, 256 }
 0x219   : > { %p610_p6 = scmp.ne.s32.totalorder %s797_s11, %s609_s15  ;;  %p614_p10 = scmp.lt.u32.totalorder %s797_s11, %s844_s2 }
 0x21a   : > { %p615_p11 = scmp.lt.u32.totalorder %s613_s30, %s609_s15  ;;  %p617_p13 = scmp.lt.u32.totalorder %s609_s15, %s797_s11 }
 0x21b   : > { %p611_p7 = pnand %p610_p6, %p754_p4 }
 0x21c   : > { %p616_p12 = por %p615_p11, %p614_p10 }
 0x21d   : > { %p612_p9 = pneg %p611_p7 }
 0x21e   : > { %p618_p0 = por %p617_p13, %p616_p12 }
 0x220   : > { %p619_p1 = pnand %p618_p0, %p612_p9 }
 0x222   : > { %622 = shalt.err (!%p619_p1)
}
 0x223   : > { %522 = dma.vmem_to_hbm [thread:$0]  (%p754_p4), %s366_s8, 128, %s797_s11, %s344_s18   ;;  %vm339_vm6 = vcmask 7168   ;;  %vm341_vm7 = vcmask 15360  }
 0x224   : > { %s474_s6 = sshll.u32 %s771_s26, 3 }
 0x225   : > { %s198_s10 = scalar_lea.vmem %s845_s3, %s474_s6 }
 0x2a3   : > { %v338_v38 = vpop.xlane.xlu1 %337 }
 0x2a4   : > { %v340_v39 = vsel %vm339_vm6, %v332_v33, %v338_v38 }
 0x2a5   : > { %342 = vst.msk [vmem:[%s198_s10] sm:$0xff] %vm341_vm7, %v340_v39 }
 0x2a6 PF: > { %p528_p2 = scmp.ge.s32.totalorder %s673_s17, 2  ;;  %s380_s19 = sand.u32 1, %s653_s12  }
 0x2a7   : > { %s381_s22 = scalar_lea.sflag [#allocation3], %s380_s19 }
 0x2a8   : > { %p525_p3 = pnand %p528_p2, %p761_p8 }
 0x2aa   : > { %648 = dma.done.wait (!%p525_p3), %s381_s22, 128  }
 0x2ab   : > { %650 = vsyncadd (!%p525_p3), %s381_s22, 4294967168  ;;  %s17_s17 = sadd.s32 1, %s673_s17   ;;  %s848_s12 = smov %s657_s13 }
 0x2ac   : > { %p14_p4 = scmp.ge.s32.totalorder %s17_s17, 4   ;;  %s849_s13 = smov %s661_s14 }
 0x2ad   : > { %s850_s14 = smov %s767_s25  ;;  %s851_s15 = smov %s669_s16 }
 0x2ae   : > { %s852_s16 = smov %s854_s20  ;;  %16 = sbr.rel (!%p14_p4) target bundleno = 4 (0x4), region = 75 }
 0x2b5   :  { %396 = vsyncpa [#allocation3], 1 }
 0x2b6   :  { %398 = vsyncpa [#allocation3 + $0x1], 1 }

// kernel: _decoder_in_layer_impl.3
= control target key start
LH: loop header
LB: loop body
LE: loop exit
PB: predicated region body
PF: predicated region fallthrough
CT: control target
= control target key end

     0   :  { %8 = vsyncpa [#allocation3], 0  ;;  %s710_s0 = inlined_call_operand.hbm [shape: f32[2,8,16], index: 0, kind: input, shape index: {}, may-alias: {0,3}]   ;;  %s711_s1 = inlined_call_operand.vmem [shape: f32[8,1], index: 1, kind: input, shape index: {}]   ;;  %s712_s2 = inlined_call_operand.vmem [shape: f32[8,1], index: 2, kind: input, shape index: {}]   ;;  %s713_s3 = inlined_call_operand.hbm [shape: f32[2,8,16], index: 3, kind: output, shape index: {}, may-alias: {0,3}]  }
   0x1   :  { %10 = vsyncpa [#allocation3 + $0x1], 0 }
   0x2   :  { %11 = vsyncpa [#allocation4], 0 }
   0x3   :  { %13 = vsyncpa [#allocation4 + $0x1], 0  ;;  %s532_s12 = smov 0   ;;  %s534_s13 = smov 0  }
   0x4   :  { %s536_s14 = smov 0   ;;  %s538_s15 = smov 0  }
   0x5   :  { %s540_s16 = smov 0   ;;  %s542_s17 = smov 0  }
   0x6 LB: > { %s318_s18 = sadd.s32 4294967295, %s507_s17   ;;  %s319_s19 = sadd.s32 4294967294, %s507_s17   ;;  %s507_s17 = sphi %s542_s17, %s19_s17   ;;  %s503_s16 = sphi %s540_s16, %s729_s16   ;;  %s499_s15 = sphi %s538_s15, %s728_s15   ;;  %s495_s14 = sphi %s536_s14, %s727_s14   ;;  %s491_s13 = sphi %s534_s13, %s726_s13   ;;  %s487_s12 = sphi %s532_s12, %s725_s12  }
   0x7   : > { %s31_s20 = sadd.s32 1, %s503_s16  ;;  %s40_s21 = sadd.s32 1, %s495_s14 }
   0x8   : > { %p33_p0 = scmp.ge.s32.totalorder %s31_s20, 2  ;;  %p47_p1 = scmp.ne.s32.totalorder %s495_s14, %s491_s13 }
   0x9   : > { %p48_p2 = scmp.eq.s32.totalorder %s507_s17, 0  ;;  %p53_p3 = scmp.ne.s32.totalorder %s491_s13, %s487_s12 }
   0xa   : > { %s731_s20 = smov (%p33_p0, %s31_s20), 0  ;;  %p54_p5 = scmp.eq.s32.totalorder %s318_s18, 0 }
   0xb   : > { %p573_p4 = por %p48_p2, %p47_p1  ;;  %s35_s23 = ssub.s32 %s503_s16, %s731_s20 }
   0xc   : > { %p121_p6 = scmp.eq.s32.totalorder %s318_s18, 1  ;;  %p38_p7 = scmp.eq.s32.totalorder %s35_s23, 0 }
   0xd   : > { %p579_p8 = por %p54_p5, %p53_p3  ;;  %p127_p10 = scmp.eq.s32.totalorder %s319_s19, 1 }
   0xe   : > { %p583_p9 = por %p121_p6, %p47_p1  ;;  %p343_p13 = scmp.lt.s32.totalorder %s507_s17, 2 }
   0xf   : > { %s588_s26 = scalar_select %p38_p7, %s495_s14, %s40_s21  }
  0x10   : > { %s717_s25 = scalar_select %p583_p9, 1, 0 }
  0x11   : > { %p590_p11 = por %p127_p10, %p53_p3  ;;  %s153_s28 = sand.u32 1, %s495_s14  }
  0x12   : > { %s322_s29 = sshll.u32 %s153_s28, 3  ;;  %s323_s30 = sshll.u32 %s503_s16, 7 }
  0x13   : > { %s718_s27 = scalar_select %p590_p11, 1, 0 }
  0x14   : > { %s601_s6 = scalar_lea.hbm %s710_s0, %s323_s30  ;;  %s157_s7 = scalar_lea.vmem [#allocation2], %s322_s29 }
  0x15   : > { %s165_s8 = sshll.u32 %s157_s7, 4  ;;  %p607_p0 = pnand %p343_p13, %p573_p4  ;;  %s603_s8 = int_to_ptr.vmem [resolvable:$true] %s165_s8 }
  0x16   : > { %s154_s10 = scalar_lea.sflag [#allocation3], %s153_s28  ;;  %s395_s11 = scalar_lea.hbm %s601_s6, 128 }
  0x17   : > { %p396_p3 = scmp.ne.s32.totalorder %s601_s6, %s395_s11  ;;  %p397_p5 = pneg %p607_p0 }
  0x18   : > { %s400_s21 = scalar_lea.hbm %s710_s0, 256  ;;  %p401_p4 = scmp.lt.u32.totalorder %s601_s6, %s710_s0 }
  0x19   : > { %p398_p6 = pnand %p397_p5, %p396_p3  ;;  %p402_p10 = scmp.lt.u32.totalorder %s400_s21, %s395_s11 }
  0x1a   : > { %p404_p12 = scmp.lt.u32.totalorder %s395_s11, %s601_s6 }
  0x1b   : > { %p399_p7 = pneg %p398_p6  ;;  %p403_p13 = por %p402_p10, %p401_p4 }
  0x1d   : > { %p405_p1 = por %p404_p12, %p403_p13 }
  0x1f   : > { %p406_p2 = pnand %p405_p1, %p399_p7 }
  0x21   : > { %409 = shalt.err (!%p406_p2)
}
  0x22   : > { %s410_s28 = scalar_lea.vmem %s603_s8, 128  ;;  %s509_s29 = smov [#allocation2]  }
  0x23   : > { %p411_p3 = scmp.ne.s32.totalorder %s603_s8, %s410_s28  ;;  %s415_s30 = sshll.u32 %s509_s29, 4  ;;  %s416_s30 = int_to_ptr.vmem [resolvable:$false] %s415_s30 }
  0x24   : > { %s417_s4 = scalar_lea.vmem %s416_s30, 256  ;;  %p418_p9 = scmp.lt.s32.totalorder %s603_s8, %s416_s30 }
  0x25   : > { %p413_p6 = pnand %p411_p3, %p397_p5  ;;  %p419_p4 = scmp.lt.s32.totalorder %s417_s4, %s410_s28 }
  0x27   : > { %p414_p11 = pneg %p413_p6  ;;  %p420_p10 = por %p419_p4, %p418_p9 }
  0x29   : > { %p421_p12 = pnand %p420_p10, %p414_p11 }
  0x2b   : > { %424 = shalt.err (!%p421_p12)
}
  0x2c   : > { %338 = dma.hbm_to_vmem [thread:$0]  (!%p607_p0), %s601_s6, 128, %s603_s8, %s154_s10  }
  0x2d   : > { %p720_p1 = scmp.lt.s32.totalorder %s507_s17, 3  ;;  %p721_p2 = scmp.ge.s32.totalorder %s507_s17, 1 }
  0x2f   : > { %p171_p5 = pnand %p721_p2, %p720_p1 }
  0x30   : > { %s643_s5 = sand.u32 (!%p171_p5), 1, %s491_s13  }
  0x31   : > { %174 = sbr.rel (%p171_p5) target bundleno = 210 (0xd2), region = 32  ;;  %s325_s7 = sshll.u32 (!%p171_p5), %s643_s5, 3 }
  0x32   : > { %s177_s11 = scalar_lea.sflag (!%p171_p5), [#allocation3], %s643_s5  ;;  %s180_s18 = scalar_lea.vmem (!%p171_p5), [#allocation2], %s325_s7 }
  0x38   : > { %478 = dma.done.wait (%p579_p8), %s177_s11, 128  }
  0x39   : > { %480 = vsyncadd (%p579_p8), %s177_s11, 4294967168  ;;  %v510_v0 = vmov 0   ;;  %v204_v1 = vld [vmem:[%s711_s1] sm:$0xff]  ;;  %s328_s24 = sshll.u32 %s499_s15, 7  ;;  %s202_s19 = scalar_lea.vmem [#allocation5], %s325_s7  ;;  %vm221_vm1 = vcmask 130048  }
  0x3a   : > { %394 = vset.pattern.permute.xlu0 %v510_v0  ;;  %v211_v2 = vld [vmem:[%s712_s2] sm:$0xff]  ;;  %s238_s21 = sshll.u32 %s202_s19, 4  ;;  %s661_s28 = scalar_lea.hbm %s713_s3, %s328_s24  ;;  %s663_s21 = int_to_ptr.vmem [resolvable:$true] %s238_s21 }
  0x3b   : > { %207 = vperm.xlu0 %394, %v204_v1   ;;  %v203_v4 = vld [vmem:[%s180_s18] sm:$0xff]  ;;  %s224_s29 = scalar_lea.sflag [#allocation4], %s643_s5  ;;  %s425_s30 = scalar_lea.vmem %s663_s21, 128 }
  0x3c   : > { %p426_p8 = scmp.ne.s32.totalorder %s663_s21, %s425_s30  ;;  %p722_p9 = scmp.ne.s32.totalorder %s717_s25, 0 }
  0x3d   : > { %s511_s15 = smov [#allocation5]  }
  0x3e   : > { %p427_p11 = pnand %p426_p8, %p722_p9  ;;  %s429_s4 = sshll.u32 %s511_s15, 4  ;;  %s430_s4 = int_to_ptr.vmem [resolvable:$false] %s429_s4 }
  0x3f   : > { %214 = vperm.xlu0 %394, %v211_v2   ;;  %s431_s7 = scalar_lea.vmem %s430_s4, 256  ;;  %p432_p7 = scmp.lt.s32.totalorder %s663_s21, %s430_s4 }
  0x40   : > { %p428_p0 = pneg %p427_p11  ;;  %p433_p13 = scmp.lt.s32.totalorder %s431_s7, %s425_s30 }
  0x42   : > { %p434_p3 = por %p433_p13, %p432_p7 }
  0x44   : > { %p435_p6 = pnand %p434_p3, %p428_p0 }
  0xba   : > { %v208_v3 = vpop.permute.xlu0 %207 }
  0xbb   : > { %v210_v5 = vmul.f32 %v208_v3, %v203_v4 }
  0xbe   : > { %v215_v6 = vpop.permute.xlu0 %214 }
  0xbf   : > { %v217_v7 = vadd.f32 %v215_v6, %v210_v5 }
  0xc1   : > { %vm218_vm0 = vcmp.ge.f32.partialorder %v217_v7, 0.0  ;;  %v219_v8 = vmul.f32 0.1, %v217_v7 }
  0xc3   : > { %v220_v9 = vsel %vm218_vm0, %v217_v7, %v219_v8 }
  0xc4   : > { %222 = vst.msk [vmem:[%s202_s19] sm:$0xff] %vm221_vm1, %v220_v9 }
  0xc5   : > { %438 = shalt.err (!%p435_p6)
}
  0xc6   : > { %s439_s5 = scalar_lea.hbm %s661_s28, 128  ;;  %s443_s6 = scalar_lea.hbm %s713_s3, 256 }
  0xc7   : > { %p440_p4 = scmp.ne.s32.totalorder %s661_s28, %s439_s5  ;;  %p444_p1 = scmp.lt.u32.totalorder %s661_s28, %s713_s3 }
  0xc8   : > { %p445_p2 = scmp.lt.u32.totalorder %s443_s6, %s439_s5  ;;  %p447_p8 = scmp.lt.u32.totalorder %s439_s5, %s661_s28 }
  0xc9   : > { %p441_p10 = pnand %p440_p4, %p722_p9 }
  0xca   : > { %p446_p5 = por %p445_p2, %p444_p1 }
  0xcb   : > { %p442_p12 = pneg %p441_p10 }
  0xcc   : > { %p448_p11 = por %p447_p8, %p446_p5 }
  0xce   : > { %p449_p0 = pnand %p448_p11, %p442_p12 }
  0xd0   : > { %452 = shalt.err (!%p449_p0)
}
  0xd1   : > { %333 = dma.vmem_to_hbm [thread:$0]  (%p722_p9), %s663_s21, 128, %s661_s28, %s224_s29  }
  0xd2 PF: > { %s250_s10 = sand.u32 1, %s487_s12   ;;  %p723_p7 = scmp.ne.s32.totalorder %s718_s27, 0 }
  0xd3   : > { %p724_p13 = scmp.ge.s32.totalorder %s507_s17, 2  ;;  %s251_s24 = scalar_lea.sflag [#allocation4], %s250_s10 }
  0xd5   : > { %p340_p3 = pnand %p724_p13, %p723_p7 }
  0xd7   : > { %482 = dma.done.wait (!%p340_p3), %s251_s24, 128  }
  0xd8   : > { %484 = vsyncadd (!%p340_p3), %s251_s24, 4294967168  ;;  %s19_s17 = sadd.s32 1, %s507_s17   ;;  %s725_s12 = smov %s491_s13 }
  0xd9   : > { %p16_p6 = scmp.ge.s32.totalorder %s19_s17, 4   ;;  %s726_s13 = smov %s495_s14 }
  0xda   : > { %s727_s14 = smov %s588_s26  ;;  %s728_s15 = smov %s503_s16 }
  0xdb   : > { %s729_s16 = smov %s731_s20  ;;  %18 = sbr.rel (!%p16_p6) target bundleno = 6 (0x6), region = 77 }
  0xe2   :  { %256 = vsyncpa [#allocation3], 1 }
  0xe3   :  { %258 = vsyncpa [#allocation3 + $0x1], 1 }
  0xe4   :  { %259 = vsyncpa [#allocation4], 1 }
  0xe5   :  { %261 = vsyncpa [#allocation4 + $0x1], 1 }

</bundles_post_ra>
